<compile_context>
chip_gen: v7x
topology: tpu7x:2x2x1
jax: 0.10.0
libtpu: 0.0.40
codegen_flags: <defaults>
</compile_context>

<pallas_src>
import functools

import jax
import jax.numpy as jnp
from jax.experimental import pallas as pl
from jax.experimental.pallas import tpu as pltpu

N_ACT = 3   # shift / reduce-left / reduce-right


def action_chooser_kernel(x_ref, w1_ref, b1_ref, w2_ref, b2_ref, out_ref):
    # linear1 + ReLU, f32 accumulation on the MXU.
    h = jnp.maximum(
        jnp.dot(x_ref[...], w1_ref[...], preferred_element_type=jnp.float32)
        + b1_ref[...],
        0.0,
    )
    # linear2 -> (tile_b, 3) logits.
    logits = (
        jnp.dot(h, w2_ref[...], preferred_element_type=jnp.float32) + b2_ref[...]
    )
    # Numerically-stable log_softmax along the 3-way action axis.
    m = jnp.max(logits, axis=-1, keepdims=True)
    shifted = logits - m
    lse = jnp.log(jnp.sum(jnp.exp(shifted), axis=-1, keepdims=True))
    out_ref[...] = (shifted - lse).astype(out_ref.dtype)


def _round_up(x, m):
    return (x + m - 1) // m * m


def concat_and_flatten(inputs):
    """utils.concat_and_flatten: concat per-feature embeddings along last axis."""
    return jnp.concatenate(list(inputs), axis=-1)


@functools.partial(jax.jit, static_argnames=("tile_b",))
def action_chooser_forward(embeds, w1, b1, w2, b2, *, tile_b=1024):
    """embeds: (B, D); w1: (D, D); b1: (1, D); w2: (D, 3); b2: (1, 3).
    Weights are stored transposed vs torch ((in, out)) so the kernel does x @ W.
    Returns (B, 3) log-probabilities."""
    B, D = embeds.shape
    assert w1.shape == (D, D) and w2.shape == (D, N_ACT)

    # Cap the tile so the grid keeps >= 2 steps (v7x megacore: both TCs busy),
    # keeping rows 8-aligned. On v5e/v6e this only affects pipelining.
    tile_b = max(8, min(tile_b, _round_up(pl.cdiv(B, 2), 8)))
    grid = (pl.cdiv(B, tile_b),)

    cost = pl.CostEstimate(
        flops=2 * B * D * (D + N_ACT),
        transcendentals=B * (N_ACT + 1),
        bytes_accessed=4 * (B * (D + N_ACT) + D * D + D + D * N_ACT + N_ACT),
    )

    return pl.pallas_call(
        action_chooser_kernel,
        out_shape=jax.ShapeDtypeStruct((B, N_ACT), jnp.float32),
        grid=grid,
        in_specs=[
            pl.BlockSpec((tile_b, D), lambda i: (i, 0)),
            pl.BlockSpec((D, D), lambda i: (0, 0)),       # W1 resident in VMEM
            pl.BlockSpec((1, D), lambda i: (0, 0)),       # b1 resident
            pl.BlockSpec((D, N_ACT), lambda i: (0, 0)),   # W2 resident (3 == full dim)
            pl.BlockSpec((1, N_ACT), lambda i: (0, 0)),   # b2 resident
        ],
        out_specs=pl.BlockSpec((tile_b, N_ACT), lambda i: (i, 0)),
        compiler_params=pltpu.CompilerParams(
            dimension_semantics=("parallel",),            # shard batch across TCs
        ),
        cost_estimate=cost,
    )(embeds, w1, b1, w2, b2)


def init_params(key, input_dim):
    """Deterministic init mimicking nn.Linear (uniform +/- 1/sqrt(fan_in))."""
    k1, k2, k3, k4 = jax.random.split(key, 4)
    bound = 1.0 / jnp.sqrt(jnp.float32(input_dim))
    w1 = jax.random.uniform(k1, (input_dim, input_dim), jnp.float32, -bound, bound)
    b1 = jax.random.uniform(k2, (1, input_dim), jnp.float32, -bound, bound)
    w2 = jax.random.uniform(k3, (input_dim, N_ACT), jnp.float32, -bound, bound)
    b2 = jax.random.uniform(k4, (1, N_ACT), jnp.float32, -bound, bound)
    return w1, b1, w2, b2


def reference_forward(embeds, w1, b1, w2, b2):
    h = jnp.maximum(embeds @ w1 + b1, 0.0)
    return jax.nn.log_softmax(h @ w2 + b2, axis=-1)


if __name__ == "__main__":
    key = jax.random.PRNGKey(0)
    k_feat, k_par = jax.random.split(key)

    # A batch of parser states: 4 features, each an 8-dim embedding -> input_dim=32.
    # batch=500 exercises the masked boundary-block path (2 tiles of 256 rows).
    n_feats, emb_dim, batch = 4, 8, 500
    input_dim = n_feats * emb_dim

    feat_keys = jax.random.split(k_feat, n_feats)
    feats = [jax.random.normal(k, (batch, emb_dim), jnp.float32) for k in feat_keys]
    embeds = concat_and_flatten(feats)                     # (B, input_dim)

    w1, b1, w2, b2 = init_params(k_par, input_dim)

    log_probs = jax.block_until_ready(
        action_chooser_forward(embeds, w1, b1, w2, b2, tile_b=1024))

    ref = reference_forward(embeds, w1, b1, w2, b2)
    assert log_probs.shape == (batch, N_ACT), log_probs.shape
    max_err = float(jnp.max(jnp.abs(log_probs - ref)))
    assert jnp.allclose(log_probs, ref, atol=1e-4, rtol=1e-4), max_err

    print("KERNEL_OK")
</pallas_src>

<mosaic_0001>
module attributes {stable_mosaic.version = 11 : i64} {
  func.func @action_chooser_kernel(%arg0: i32, %arg1: memref<256x32xf32, #tpu.memory_space<vmem>>, %arg2: memref<32x32xf32, #tpu.memory_space<vmem>>, %arg3: memref<1x32xf32, #tpu.memory_space<vmem>>, %arg4: memref<32x3xf32, #tpu.memory_space<vmem>>, %arg5: memref<1x3xf32, #tpu.memory_space<vmem>>, %arg6: memref<256x3xf32, #tpu.memory_space<vmem>>) attributes {dimension_semantics = [#tpu.dimension_semantics<parallel>], iteration_bounds = array<i64: 2>, scalar_prefetch = 0 : i64, scratch_operands = 0 : i64, tpu.core_type = #tpu.core_type<tc>, window_params = [{transform_indices = @transform_0, window_bounds = array<i64: 256, 32>}, {pipeline_mode = #tpu.pipeline_mode<synchronous>, transform_indices = @transform_1, window_bounds = array<i64: 32, 32>}, {pipeline_mode = #tpu.pipeline_mode<synchronous>, transform_indices = @transform_2, window_bounds = array<i64: 1, 32>}, {pipeline_mode = #tpu.pipeline_mode<synchronous>, transform_indices = @transform_3, window_bounds = array<i64: 32, 3>}, {pipeline_mode = #tpu.pipeline_mode<synchronous>, transform_indices = @transform_4, window_bounds = array<i64: 1, 3>}, {transform_indices = @transform_5, window_bounds = array<i64: 256, 3>}]} {
    %c0 = arith.constant 0 : index
    %c0_0 = arith.constant 0 : index
    %0 = vector.load %arg1[%c0, %c0_0] : memref<256x32xf32, #tpu.memory_space<vmem>>, vector<256x32xf32>
    %c0_1 = arith.constant 0 : index
    %c0_2 = arith.constant 0 : index
    %1 = vector.load %arg2[%c0_1, %c0_2] : memref<32x32xf32, #tpu.memory_space<vmem>>, vector<32x32xf32>
    %cst = arith.constant dense<0.000000e+00> : vector<256x32xf32>
    %2 = tpu.matmul %0, %1, %cst {dimension_numbers = #tpu.dot_dimension_numbers<[1], [0], [0], [1], [0, 0, 1, 1], [], []>} : vector<256x32xf32>, vector<32x32xf32>, vector<256x32xf32> -> vector<256x32xf32>
    %c0_3 = arith.constant 0 : index
    %c0_4 = arith.constant 0 : index
    %3 = vector.load %arg3[%c0_3, %c0_4] : memref<1x32xf32, #tpu.memory_space<vmem>>, vector<1x32xf32>
    %4 = vector.broadcast %3 : vector<1x32xf32> to vector<256x32xf32>
    %5 = arith.addf %2, %4 : vector<256x32xf32>
    %cst_5 = arith.constant 0.000000e+00 : f32
    %6 = vector.broadcast %cst_5 : f32 to vector<256x32xf32>
    %7 = arith.maximumf %5, %6 : vector<256x32xf32>
    %c0_6 = arith.constant 0 : index
    %c0_7 = arith.constant 0 : index
    %8 = vector.load %arg4[%c0_6, %c0_7] : memref<32x3xf32, #tpu.memory_space<vmem>>, vector<32x3xf32>
    %cst_8 = arith.constant dense<0.000000e+00> : vector<256x3xf32>
    %9 = tpu.matmul %7, %8, %cst_8 {dimension_numbers = #tpu.dot_dimension_numbers<[1], [0], [0], [1], [0, 0, 1, 1], [], []>} : vector<256x32xf32>, vector<32x3xf32>, vector<256x3xf32> -> vector<256x3xf32>
    %c0_9 = arith.constant 0 : index
    %c0_10 = arith.constant 0 : index
    %10 = vector.load %arg5[%c0_9, %c0_10] : memref<1x3xf32, #tpu.memory_space<vmem>>, vector<1x3xf32>
    %11 = vector.broadcast %10 : vector<1x3xf32> to vector<256x3xf32>
    %12 = arith.addf %9, %11 : vector<256x3xf32>
    %cst_11 = arith.constant dense<0xFF800000> : vector<256xf32>
    %13 = vector.multi_reduction <maximumf>, %12, %cst_11 [1] : vector<256x3xf32> to vector<256xf32>
    %14 = vector.shape_cast %13 : vector<256xf32> to vector<256x1xf32>
    %15 = vector.broadcast %14 : vector<256x1xf32> to vector<256x3xf32>
    %16 = arith.subf %12, %15 : vector<256x3xf32>
    %17 = math.exp %16 : vector<256x3xf32>
    %cst_12 = arith.constant dense<0.000000e+00> : vector<256xf32>
    %18 = vector.multi_reduction <add>, %17, %cst_12 [1] : vector<256x3xf32> to vector<256xf32>
    %19 = vector.shape_cast %18 : vector<256xf32> to vector<256x1xf32>
    %20 = math.log %19 : vector<256x1xf32>
    %21 = vector.broadcast %20 : vector<256x1xf32> to vector<256x3xf32>
    %22 = arith.subf %16, %21 : vector<256x3xf32>
    %c0_13 = arith.constant 0 : index
    %c0_14 = arith.constant 0 : index
    %23 = vector.load %arg6[%c0_13, %c0_14] : memref<256x3xf32, #tpu.memory_space<vmem>>, vector<256x3xf32>
    tpu.vector_store %arg6[%c0_13, %c0_14], %22 {strides = array<i32>} : memref<256x3xf32, #tpu.memory_space<vmem>>, vector<256x3xf32>,
    return
  }
  func.func @transform_0(%arg0: i32) -> (i32, i32) {
    %c0_i32 = arith.constant 0 : i32
    %c0_i32_0 = arith.constant 0 : i32
    return %arg0, %c0_i32 : i32, i32
  }
  func.func @transform_1(%arg0: i32) -> (i32, i32) {
    %c0_i32 = arith.constant 0 : i32
    %c0_i32_0 = arith.constant 0 : i32
    %c0_i32_1 = arith.constant 0 : i32
    return %c0_i32, %c0_i32_0 : i32, i32
  }
  func.func @transform_2(%arg0: i32) -> (i32, i32) {
    %c0_i32 = arith.constant 0 : i32
    %c0_i32_0 = arith.constant 0 : i32
    %c0_i32_1 = arith.constant 0 : i32
    return %c0_i32, %c0_i32_0 : i32, i32
  }
  func.func @transform_3(%arg0: i32) -> (i32, i32) {
    %c0_i32 = arith.constant 0 : i32
    %c0_i32_0 = arith.constant 0 : i32
    %c0_i32_1 = arith.constant 0 : i32
    return %c0_i32, %c0_i32_0 : i32, i32
  }
  func.func @transform_4(%arg0: i32) -> (i32, i32) {
    %c0_i32 = arith.constant 0 : i32
    %c0_i32_0 = arith.constant 0 : i32
    %c0_i32_1 = arith.constant 0 : i32
    return %c0_i32, %c0_i32_0 : i32, i32
  }
  func.func @transform_5(%arg0: i32) -> (i32, i32) {
    %c0_i32 = arith.constant 0 : i32
    %c0_i32_0 = arith.constant 0 : i32
    return %arg0, %c0_i32 : i32, i32
  }
}

</mosaic_0001>

<bundles_post_ra>
// kernel: action_chooser_forward.1
= control target key start
LH: loop header
LB: loop body
LE: loop exit
PB: predicated region body
PF: predicated region fallthrough
CT: control target
= control target key end

     0   :  { %s2358_s18 = smov 0   ;;  %s2360_s19 = smov 0   ;;  %s3117_s0 = inlined_call_operand.vmem [shape: f32[500,32], index: 0, kind: input, shape index: {}]   ;;  %s3118_s1 = inlined_call_operand.vmem [shape: f32[32,32], index: 1, kind: input, shape index: {}]   ;;  %s3119_s2 = inlined_call_operand.vmem [shape: f32[1,32], index: 2, kind: input, shape index: {}]   ;;  %s3120_s3 = inlined_call_operand.vmem [shape: f32[32,3], index: 3, kind: input, shape index: {}]   ;;  %s3121_s4 = inlined_call_operand.vmem [shape: f32[1,3], index: 4, kind: input, shape index: {}]   ;;  %s3122_s5 = inlined_call_operand.vmem [shape: f32[500,3], index: 5, kind: output, shape index: {}]  }
   0x1   :  { %s2362_s20 = smov 0  }
   0x2 LB: > { %s2371_s21 = sadd.s32 4294967295, %s2294_s20   ;;  %s2373_s22 = sadd.s32 1, %s2294_s20   ;;  %s2294_s20 = sphi %s2362_s20, %s3131_s20   ;;  %s2290_s19 = sphi %s2360_s19, %s3130_s19   ;;  %s2286_s18 = sphi %s2358_s18, %s3129_s18  }
   0x3   : > { %s129_s23 = ssub.s32 %s2294_s20, %s2373_s22  ;;  %s132_s24 = sadd.s32 1, %s2290_s19 }
   0x4   : > { %p130_p0 = scmp.eq.s32.totalorder %s129_s23, 0  ;;  %p142_p1 = scmp.ne.s32.totalorder %s2290_s19, %s2286_s18 }
   0x5   : > { %p143_p2 = scmp.eq.s32.totalorder %s2371_s21, 1  ;;  %p1734_p3 = scmp.ge.s32.totalorder %s2294_s20, 1 }
   0x6   : > { %s2381_s25 = scalar_select %p130_p0, %s2290_s19, %s132_s24  }
   0x7   : > { %p2383_p4 = por %p143_p2, %p142_p1  ;;  %p196_p5 = scmp.lt.s32.totalorder %s2294_s20, 3 }
   0x9   : > { %p197_p6 = pnand %p1734_p3, %p196_p5 }
   0xa   : > { %v278_v0 = vld [vmem:[%s3118_s1] sm:$0xff] (!%p197_p6)  ;;  %v279_v1 = vld [vmem:[%s3118_s1 + $0x8] sm:$0xff] (!%p197_p6)  ;;  %v280_v2 = vld [vmem:[%s3118_s1 + $0x10] sm:$0xff] (!%p197_p6)  ;;  %s2397_s8 = sshll.u32 (!%p197_p6), %s2371_s21, 5  ;;  %vm289_vm0 = vcmask (!%p197_p6), 261120   ;;  %vm975_vm1 = vcmask (!%p197_p6), 23552  }
   0xb   : > { %200 = sbr.rel (%p197_p6) target bundleno = 894 (0x37e), region = 40  ;;  %v2008_v3 = vpack.c.bf16 (!%p197_p6), %v279_v1, %v278_v0  ;;  %v281_v4 = vld [vmem:[%s3118_s1 + $0x18] sm:$0xff] (!%p197_p6)  ;;  %p232_p7 = scmp.lt.s32.totalorder (!%p197_p6), %s2397_s8, 62  ;;  %v643_v5 = vld [vmem:[%s3120_s3] sm:$0xff] (!%p197_p6)  ;;  %v644_v6 = vld [vmem:[%s3120_s3 + $0x8] sm:$0xff] (!%p197_p6) }
   0xc   : > { %v2012_v7 = vpack.c.bf16 (!%p197_p6), %v281_v4, %v280_v2  ;;  %v2016_v8 = vpack.c.bf16 (!%p197_p6), %v644_v6, %v643_v5  ;;  %v645_v41 = vld [vmem:[%s3120_s3 + $0x10] sm:$0xff] (!%p197_p6)  ;;  %v646_v42 = vld [vmem:[%s3120_s3 + $0x18] sm:$0xff] (!%p197_p6)  ;;  %v2488_v44 = vld [vmem:[%s3119_s2] ss:$0 sm:$0xff] (!%p197_p6)  ;;  %s224_s10 = sand.u32 (!%p197_p6), 1, %s2286_s18  }
   0xd   : > { %2009 = vmatprep.subr.bf16.mxu0 (!%p197_p6), %v2008_v3  ;;  %v2020_v43 = vpack.c.bf16 (!%p197_p6), %v646_v42, %v645_v41  ;;  %s1735_s11 = sshll.u32 (!%p197_p6), %s224_s10, 8 }
   0xe   : > { %2011 = vmatpush3.bf16.msra.mxu0 (!%p197_p6), %v2008_v3  ;;  %2017 = vmatprep.subr.bf16.mxu1 (!%p197_p6), %v2016_v8  ;;  %s2881_s12 = scalar_lea.vmem (!%p197_p6), [#allocation2], %s1735_s11  }
   0xf   : > { %2013 = vmatprep.subr.bf16.mxu0 (!%p197_p6), %v2012_v7  ;;  %2019 = vmatpush3.bf16.msra.mxu1 (!%p197_p6), %v2016_v8 }
  0x10   : > { %2021 = vmatprep.subr.bf16.mxu1 (!%p197_p6), %v2020_v43 }
  0x12   : > { %s233_s15 = scalar_select %p232_p7, %s2397_s8, 62  ;;  %2015 = vmatpush3.bf16.msra.mxu0 %v2012_v7 }
  0x13   : > { %2023 = vmatpush3.bf16.msra.mxu1 %v2020_v43  ;;  %s1400_s18 = ssub.s32 (%p2383_p4), 63, %s2397_s8  ;;  %s1821_s13 = sshll.u32 (%p2383_p4), %s2371_s21, 8 }
  0x14   : > { %s1737_s16 = sshll.u32 %s233_s15, 3  ;;  %p1401_p8 = scmp.lt.s32.totalorder (%p2383_p4), %s1400_s18, 32 }
  0x15   : > { %s2413_s23 = scalar_lea.vmem %s3117_s0, %s1737_s16  ;;  %s2985_s16 = scalar_lea.vmem (%p2383_p4), %s3122_s5, %s1821_s13  }
  0x16   : > { %v246_v9 = vld [vmem:[%s2413_s23] sm:$0xff]  ;;  %v247_v10 = vld [vmem:[%s2413_s23 + $0x8] sm:$0xff]  ;;  %v248_v11 = vld [vmem:[%s2413_s23 + $0x10] sm:$0xff] }
  0x17   : > { %1904 = vmatprep.mubr.msk.f32.mxu0 %vm289_vm0, %v246_v9  ;;  %v249_v12 = vld [vmem:[%s2413_s23 + $0x18] sm:$0xff]  ;;  %v250_v13 = vld [vmem:[%s2413_s23 + $0x20] sm:$0xff]  ;;  %v251_v14 = vld [vmem:[%s2413_s23 + $0x28] sm:$0xff] }
  0x18   : > { %1905 = vmatmul.mubr.msk.f32.vlgmr.msra.gmra.mrb[0].mxu0 %vm289_vm0, %v247_v10  ;;  %v252_v15 = vld [vmem:[%s2413_s23 + $0x30] sm:$0xff]  ;;  %v253_v16 = vld [vmem:[%s2413_s23 + $0x38] sm:$0xff]  ;;  %v254_v17 = vld [vmem:[%s2413_s23 + $0x40] sm:$0xff] }
  0x19   : > { %1907 = vmatprep.mubr.msk.f32.mxu0 %vm289_vm0, %v248_v11  ;;  %v255_v18 = vld [vmem:[%s2413_s23 + $0x48] sm:$0xff]  ;;  %v256_v19 = vld [vmem:[%s2413_s23 + $0x50] sm:$0xff]  ;;  %v257_v20 = vld [vmem:[%s2413_s23 + $0x58] sm:$0xff] }
  0x1a   : > { %v258_v21 = vld [vmem:[%s2413_s23 + $0x60] sm:$0xff]  ;;  %v259_v22 = vld [vmem:[%s2413_s23 + $0x68] sm:$0xff]  ;;  %v260_v23 = vld [vmem:[%s2413_s23 + $0x70] sm:$0xff] }
  0x1b   : > { %v261_v24 = vld [vmem:[%s2413_s23 + $0x78] sm:$0xff]  ;;  %v262_v25 = vld [vmem:[%s2413_s23 + $0x80] sm:$0xff]  ;;  %v263_v26 = vld [vmem:[%s2413_s23 + $0x88] sm:$0xff] }
  0x1c   : > { %1908 = vmatmul.mubr.msk.f32.gmra.mrb[2].mxu0 %vm289_vm0, %v249_v12  ;;  %v264_v27 = vld [vmem:[%s2413_s23 + $0x90] sm:$0xff]  ;;  %v265_v28 = vld [vmem:[%s2413_s23 + $0x98] sm:$0xff]  ;;  %v266_v29 = vld [vmem:[%s2413_s23 + $0xa0] sm:$0xff] }
  0x1d   : > { %1910 = vmatprep.mubr.msk.f32.mxu0 %vm289_vm0, %v250_v13  ;;  %v267_v30 = vld [vmem:[%s2413_s23 + $0xa8] sm:$0xff]  ;;  %v268_v31 = vld [vmem:[%s2413_s23 + $0xb0] sm:$0xff]  ;;  %v269_v32 = vld [vmem:[%s2413_s23 + $0xb8] sm:$0xff] }
  0x1e   : > { %v270_v33 = vld [vmem:[%s2413_s23 + $0xc0] sm:$0xff]  ;;  %v271_v34 = vld [vmem:[%s2413_s23 + $0xc8] sm:$0xff]  ;;  %v272_v35 = vld [vmem:[%s2413_s23 + $0xd0] sm:$0xff] }
  0x1f   : > { %v273_v36 = vld [vmem:[%s2413_s23 + $0xd8] sm:$0xff]  ;;  %v274_v37 = vld [vmem:[%s2413_s23 + $0xe0] sm:$0xff]  ;;  %v275_v38 = vld [vmem:[%s2413_s23 + $0xe8] sm:$0xff] }
  0x20   : > { %1911 = vmatmul.mubr.msk.f32.gmra.mrb[4].mxu0 %vm289_vm0, %v251_v14  ;;  %v276_v39 = vld [vmem:[%s2413_s23 + $0xf0] sm:$0xff]  ;;  %v277_v40 = vld [vmem:[%s2413_s23 + $0xf8] sm:$0xff] }
  0x21   : > { %1913 = vmatprep.mubr.msk.f32.mxu0 %vm289_vm0, %v252_v15 }
  0x24   : > { %1914 = vmatmul.mubr.msk.f32.gmra.mrb[6].mxu0 %vm289_vm0, %v253_v16 }
  0x25   : > { %1916 = vmatprep.mubr.msk.f32.mxu0 %vm289_vm0, %v254_v17 }
  0x28   : > { %1917 = vmatmul.mubr.msk.f32.gmra.mrb[8].mxu0 %vm289_vm0, %v255_v18 }
  0x29   : > { %1919 = vmatprep.mubr.msk.f32.mxu0 %vm289_vm0, %v256_v19 }
  0x2c   : > { %1920 = vmatmul.mubr.msk.f32.gmra.mrb[10].mxu0 %vm289_vm0, %v257_v20 }
  0x2d   : > { %1922 = vmatprep.mubr.msk.f32.mxu0 %vm289_vm0, %v258_v21 }
  0x30   : > { %1923 = vmatmul.mubr.msk.f32.gmra.mrb[12].mxu0 %vm289_vm0, %v259_v22 }
  0x31   : > { %1925 = vmatprep.mubr.msk.f32.mxu0 %vm289_vm0, %v260_v23 }
  0x34   : > { %1926 = vmatmul.mubr.msk.f32.gmra.mrb[14].mxu0 %vm289_vm0, %v261_v24 }
  0x35   : > { %1928 = vmatprep.mubr.msk.f32.mxu0 %vm289_vm0, %v262_v25 }
  0x38   : > { %1929 = vmatmul.mubr.msk.f32.gmra.mrb[16].mxu0 %vm289_vm0, %v263_v26 }
  0x39   : > { %1931 = vmatprep.mubr.msk.f32.mxu0 %vm289_vm0, %v264_v27 }
  0x3c   : > { %1932 = vmatmul.mubr.msk.f32.gmra.mrb[18].mxu0 %vm289_vm0, %v265_v28 }
  0x3d   : > { %1934 = vmatprep.mubr.msk.f32.mxu0 %vm289_vm0, %v266_v29 }
  0x40   : > { %1935 = vmatmul.mubr.msk.f32.gmra.mrb[20].mxu0 %vm289_vm0, %v267_v30 }
  0x41   : > { %1937 = vmatprep.mubr.msk.f32.mxu0 %vm289_vm0, %v268_v31 }
  0x44   : > { %1938 = vmatmul.mubr.msk.f32.gmra.mrb[22].mxu0 %vm289_vm0, %v269_v32 }
  0x45   : > { %1940 = vmatprep.mubr.msk.f32.mxu0 %vm289_vm0, %v270_v33 }
  0x48   : > { %1941 = vmatmul.mubr.msk.f32.gmra.mrb[24].mxu0 %vm289_vm0, %v271_v34 }
  0x49   : > { %1943 = vmatprep.mubr.msk.f32.mxu0 %vm289_vm0, %v272_v35 }
  0x4c   : > { %1944 = vmatmul.mubr.msk.f32.gmra.mrb[26].mxu0 %vm289_vm0, %v273_v36 }
  0x4d   : > { %1946 = vmatprep.mubr.msk.f32.mxu0 %vm289_vm0, %v274_v37 }
  0x50   : > { %1947 = vmatmul.mubr.msk.f32.gmra.mrb[28].mxu0 %vm289_vm0, %v275_v38 }
  0x51   : > { %1949 = vmatprep.mubr.msk.f32.mxu0 %vm289_vm0, %v276_v39 }
  0x54   : > { %1950 = vmatmul.mubr.msk.f32.gmra.mrb[30].mxu0 %vm289_vm0, %v277_v40 }
  0xeb   : > { %v1906_v45 = vpop.f32.mrb[0].mxu0 }
  0xec   : > { %v458_v46 = vadd.f32 %v1906_v45, %v2488_v44  ;;  %v452_v47 = vpop.f32.mrb[1].mxu0 }
  0xed   : > { %v453_v48 = vadd.f32 %v2488_v44, %v452_v47 }
  0xee   : > { %v612_v51 = vmax.f32 %v458_v46, 0.0 }
  0xef   : > { %v611_v49 = vmax.f32 %v453_v48, 0.0  ;;  %v1909_v50 = vpop.f32.mrb[2].mxu0 }
  0xf0   : > { %v468_v52 = vadd.f32 %v1909_v50, %v2488_v44  ;;  %v462_v53 = vpop.f32.mrb[3].mxu0 }
  0xf1   : > { %v463_v54 = vadd.f32 %v2488_v44, %v462_v53  ;;  %1960 = vmatprep.mubr.msk.f32.mxu1 %vm289_vm0, %v611_v49 }
  0xf2   : > { %1961 = vmatmul.mubr.msk.f32.vlgmr.msra.gmra.mrb[0].mxu1 %vm289_vm0, %v612_v51  ;;  %v614_v57 = vmax.f32 %v468_v52, 0.0 }
  0xf3   : > { %v613_v55 = vmax.f32 %v463_v54, 0.0  ;;  %v1912_v56 = vpop.f32.mrb[4].mxu0 }
  0xf4   : > { %v478_v58 = vadd.f32 %v1912_v56, %v2488_v44  ;;  %v472_v59 = vpop.f32.mrb[5].mxu0 }
  0xf5   : > { %v473_v60 = vadd.f32 %v2488_v44, %v472_v59  ;;  %1963 = vmatprep.mubr.msk.f32.mxu1 %vm289_vm0, %v613_v55 }
  0xf6   : > { %v616_v61 = vmax.f32 %v478_v58, 0.0  ;;  %1964 = vmatmul.mubr.msk.f32.gmra.mrb[2].mxu1 %vm289_vm0, %v614_v57 }
  0xf7   : > { %v615_v62 = vmax.f32 %v473_v60, 0.0  ;;  %v1915_v63 = vpop.f32.mrb[6].mxu0 }
  0xf8   : > { %v488_v0 = vadd.f32 %v1915_v63, %v2488_v44  ;;  %v482_v1 = vpop.f32.mrb[7].mxu0 }
  0xf9   : > { %v483_v2 = vadd.f32 %v2488_v44, %v482_v1  ;;  %1966 = vmatprep.mubr.msk.f32.mxu1 %vm289_vm0, %v615_v62 }
  0xfa   : > { %v618_v3 = vmax.f32 %v488_v0, 0.0  ;;  %1967 = vmatmul.mubr.msk.f32.gmra.mrb[4].mxu1 %vm289_vm0, %v616_v61 }
  0xfb   : > { %v617_v4 = vmax.f32 %v483_v2, 0.0  ;;  %v1918_v5 = vpop.f32.mrb[8].mxu0 }
  0xfc   : > { %v498_v6 = vadd.f32 %v1918_v5, %v2488_v44  ;;  %v492_v7 = vpop.f32.mrb[9].mxu0 }
  0xfd   : > { %v493_v8 = vadd.f32 %v2488_v44, %v492_v7  ;;  %1969 = vmatprep.mubr.msk.f32.mxu1 %vm289_vm0, %v617_v4 }
  0xfe   : > { %v620_v9 = vmax.f32 %v498_v6, 0.0  ;;  %1970 = vmatmul.mubr.msk.f32.gmra.mrb[6].mxu1 %vm289_vm0, %v618_v3 }
  0xff   : > { %v619_v10 = vmax.f32 %v493_v8, 0.0  ;;  %v1921_v11 = vpop.f32.mrb[10].mxu0 }
 0x100   : > { %v508_v12 = vadd.f32 %v1921_v11, %v2488_v44  ;;  %v502_v13 = vpop.f32.mrb[11].mxu0 }
 0x101   : > { %v503_v14 = vadd.f32 %v2488_v44, %v502_v13  ;;  %1972 = vmatprep.mubr.msk.f32.mxu1 %vm289_vm0, %v619_v10 }
 0x102   : > { %v622_v15 = vmax.f32 %v508_v12, 0.0  ;;  %1973 = vmatmul.mubr.msk.f32.gmra.mrb[8].mxu1 %vm289_vm0, %v620_v9 }
 0x103   : > { %v621_v16 = vmax.f32 %v503_v14, 0.0  ;;  %v1924_v17 = vpop.f32.mrb[12].mxu0  ;;  %v2557_v14 = vld [vmem:[%s3121_s4] ss:$0 sm:$0xff] }
 0x104   : > { %v518_v18 = vadd.f32 %v1924_v17, %v2488_v44  ;;  %v512_v19 = vpop.f32.mrb[13].mxu0 }
 0x105   : > { %v513_v20 = vadd.f32 %v2488_v44, %v512_v19  ;;  %1975 = vmatprep.mubr.msk.f32.mxu1 %vm289_vm0, %v621_v16 }
 0x106   : > { %v624_v21 = vmax.f32 %v518_v18, 0.0  ;;  %1976 = vmatmul.mubr.msk.f32.gmra.mrb[10].mxu1 %vm289_vm0, %v622_v15 }
 0x107   : > { %v623_v22 = vmax.f32 %v513_v20, 0.0  ;;  %v1927_v23 = vpop.f32.mrb[14].mxu0 }
 0x108   : > { %v528_v24 = vadd.f32 %v1927_v23, %v2488_v44  ;;  %v522_v25 = vpop.f32.mrb[15].mxu0 }
 0x109   : > { %v523_v26 = vadd.f32 %v2488_v44, %v522_v25  ;;  %1978 = vmatprep.mubr.msk.f32.mxu1 %vm289_vm0, %v623_v22 }
 0x10a   : > { %v626_v27 = vmax.f32 %v528_v24, 0.0  ;;  %1979 = vmatmul.mubr.msk.f32.gmra.mrb[12].mxu1 %vm289_vm0, %v624_v21 }
 0x10b   : > { %v625_v28 = vmax.f32 %v523_v26, 0.0  ;;  %v1930_v29 = vpop.f32.mrb[16].mxu0 }
 0x10c   : > { %v538_v30 = vadd.f32 %v1930_v29, %v2488_v44  ;;  %v532_v31 = vpop.f32.mrb[17].mxu0 }
 0x10d   : > { %v533_v32 = vadd.f32 %v2488_v44, %v532_v31  ;;  %1981 = vmatprep.mubr.msk.f32.mxu1 %vm289_vm0, %v625_v28 }
 0x10e   : > { %v628_v33 = vmax.f32 %v538_v30, 0.0  ;;  %1982 = vmatmul.mubr.msk.f32.gmra.mrb[14].mxu1 %vm289_vm0, %v626_v27 }
 0x10f   : > { %v627_v34 = vmax.f32 %v533_v32, 0.0  ;;  %v1933_v35 = vpop.f32.mrb[18].mxu0 }
 0x110   : > { %v548_v36 = vadd.f32 %v1933_v35, %v2488_v44  ;;  %v542_v37 = vpop.f32.mrb[19].mxu0 }
 0x111   : > { %v543_v38 = vadd.f32 %v2488_v44, %v542_v37  ;;  %1984 = vmatprep.mubr.msk.f32.mxu1 %vm289_vm0, %v627_v34 }
 0x112   : > { %v630_v39 = vmax.f32 %v548_v36, 0.0  ;;  %1985 = vmatmul.mubr.msk.f32.gmra.mrb[16].mxu1 %vm289_vm0, %v628_v33 }
 0x113   : > { %v629_v40 = vmax.f32 %v543_v38, 0.0  ;;  %v1936_v41 = vpop.f32.mrb[20].mxu0 }
 0x114   : > { %v558_v42 = vadd.f32 %v1936_v41, %v2488_v44  ;;  %v552_v43 = vpop.f32.mrb[21].mxu0 }
 0x115   : > { %v553_v45 = vadd.f32 %v2488_v44, %v552_v43  ;;  %1987 = vmatprep.mubr.msk.f32.mxu1 %vm289_vm0, %v629_v40 }
 0x116   : > { %v632_v46 = vmax.f32 %v558_v42, 0.0  ;;  %1988 = vmatmul.mubr.msk.f32.gmra.mrb[18].mxu1 %vm289_vm0, %v630_v39 }
 0x117   : > { %v631_v47 = vmax.f32 %v553_v45, 0.0  ;;  %v1939_v48 = vpop.f32.mrb[22].mxu0 }
 0x118   : > { %v568_v49 = vadd.f32 %v1939_v48, %v2488_v44  ;;  %v562_v50 = vpop.f32.mrb[23].mxu0 }
 0x119   : > { %v563_v51 = vadd.f32 %v2488_v44, %v562_v50  ;;  %1990 = vmatprep.mubr.msk.f32.mxu1 %vm289_vm0, %v631_v47 }
 0x11a   : > { %v634_v52 = vmax.f32 %v568_v49, 0.0  ;;  %1991 = vmatmul.mubr.msk.f32.gmra.mrb[20].mxu1 %vm289_vm0, %v632_v46 }
 0x11b   : > { %v633_v53 = vmax.f32 %v563_v51, 0.0  ;;  %v1942_v54 = vpop.f32.mrb[24].mxu0 }
 0x11c   : > { %v578_v55 = vadd.f32 %v1942_v54, %v2488_v44  ;;  %v572_v56 = vpop.f32.mrb[25].mxu0 }
 0x11d   : > { %v573_v57 = vadd.f32 %v2488_v44, %v572_v56  ;;  %1993 = vmatprep.mubr.msk.f32.mxu1 %vm289_vm0, %v633_v53 }
 0x11e   : > { %v636_v58 = vmax.f32 %v578_v55, 0.0  ;;  %1994 = vmatmul.mubr.msk.f32.gmra.mrb[22].mxu1 %vm289_vm0, %v634_v52 }
 0x11f   : > { %v635_v59 = vmax.f32 %v573_v57, 0.0  ;;  %v1945_v60 = vpop.f32.mrb[26].mxu0 }
 0x120   : > { %v588_v61 = vadd.f32 %v1945_v60, %v2488_v44  ;;  %v582_v62 = vpop.f32.mrb[27].mxu0 }
 0x121   : > { %v583_v63 = vadd.f32 %v2488_v44, %v582_v62  ;;  %1996 = vmatprep.mubr.msk.f32.mxu1 %vm289_vm0, %v635_v59 }
 0x122   : > { %v638_v0 = vmax.f32 %v588_v61, 0.0  ;;  %1997 = vmatmul.mubr.msk.f32.gmra.mrb[24].mxu1 %vm289_vm0, %v636_v58 }
 0x123   : > { %v637_v1 = vmax.f32 %v583_v63, 0.0  ;;  %v1948_v2 = vpop.f32.mrb[28].mxu0 }
 0x124   : > { %v598_v3 = vadd.f32 %v1948_v2, %v2488_v44  ;;  %v592_v4 = vpop.f32.mrb[29].mxu0 }
 0x125   : > { %v593_v5 = vadd.f32 %v2488_v44, %v592_v4  ;;  %1999 = vmatprep.mubr.msk.f32.mxu1 %vm289_vm0, %v637_v1 }
 0x126   : > { %v640_v6 = vmax.f32 %v598_v3, 0.0  ;;  %2000 = vmatmul.mubr.msk.f32.gmra.mrb[26].mxu1 %vm289_vm0, %v638_v0 }
 0x127   : > { %v639_v7 = vmax.f32 %v593_v5, 0.0  ;;  %v1951_v8 = vpop.f32.mrb[30].mxu0 }
 0x128   : > { %v608_v9 = vadd.f32 %v1951_v8, %v2488_v44  ;;  %v602_v10 = vpop.f32.mrb[31].mxu0 }
 0x129   : > { %v603_v11 = vadd.f32 %v2488_v44, %v602_v10  ;;  %2002 = vmatprep.mubr.msk.f32.mxu1 %vm289_vm0, %v639_v7 }
 0x12a   : > { %v642_v12 = vmax.f32 %v608_v9, 0.0  ;;  %2003 = vmatmul.mubr.msk.f32.gmra.mrb[28].mxu1 %vm289_vm0, %v640_v6 }
 0x12b   : > { %v641_v13 = vmax.f32 %v603_v11, 0.0 }
 0x12d   : > { %2005 = vmatprep.mubr.msk.f32.mxu1 %vm289_vm0, %v641_v13 }
 0x12e   : > { %2006 = vmatmul.mubr.msk.f32.gmra.mrb[30].mxu1 %vm289_vm0, %v642_v12 }
 0x1c5   : > { %v1962_v15 = vpop.f32.mrb[0].mxu1 }
 0x1c6   : > { %v2560_v16 = vadd.f32 %v1962_v15, %v2557_v14  ;;  %v816_v44 = vpop.f32.mrb[1].mxu1 }
 0x1c7   : > { %v2563_v17 = vadd.f32 %v2557_v14, %v816_v44 }
 0x1c8   : > { %v979_v18 = vsel %vm975_vm1, %v2560_v16, -inf }
 0x1c9   : > { %980 = vmax.xlane.f32.xlu0 %v979_v18  ;;  %v1965_v19 = vpop.f32.mrb[2].mxu1  ;;  %v976_v24 = vsel %vm975_vm1, %v2563_v17, -inf }
 0x1ca   : > { %v2568_v20 = vadd.f32 %v1965_v19, %v2557_v14  ;;  %v826_v21 = vpop.f32.mrb[3].mxu1 }
 0x1cb   : > { %v2571_v22 = vadd.f32 %v2557_v14, %v826_v21 }
 0x1cc   : > { %v985_v23 = vsel %vm975_vm1, %v2568_v20, -inf }
 0x1cd   : > { %986 = vmax.xlane.f32.xlu1 %v985_v23  ;;  %v1968_v25 = vpop.f32.mrb[4].mxu1  ;;  %977 = vmax.xlane.f32.xlu0 %v976_v24  ;;  %v982_v29 = vsel %vm975_vm1, %v2571_v22, -inf }
 0x1ce   : > { %v836_v26 = vpop.f32.mrb[5].mxu1  ;;  %v2581_v28 = vadd.f32 %v1968_v25, %v2557_v14 }
 0x1cf   : > { %v2578_v27 = vadd.f32 %v2557_v14, %v836_v26 }
 0x1d0   : > { %v991_v35 = vsel %vm975_vm1, %v2581_v28, -inf }
 0x1d1   : > { %v1971_v30 = vpop.f32.mrb[6].mxu1  ;;  %983 = vmax.xlane.f32.xlu1 %v982_v29  ;;  %v988_v31 = vsel %vm975_vm1, %v2578_v27, -inf }
 0x1d2   : > { %v846_v32 = vpop.f32.mrb[7].mxu1  ;;  %989 = vmax.xlane.f32.xlu0 %v988_v31  ;;  %v2591_v34 = vadd.f32 %v1971_v30, %v2557_v14 }
 0x1d3   : > { %v2588_v33 = vadd.f32 %v2557_v14, %v846_v32 }
 0x1d4   : > { %v997_v41 = vsel %vm975_vm1, %v2591_v34, -inf }
 0x1d5   : > { %v1974_v36 = vpop.f32.mrb[8].mxu1  ;;  %992 = vmax.xlane.f32.xlu1 %v991_v35  ;;  %v994_v37 = vsel %vm975_vm1, %v2588_v33, -inf }
 0x1d6   : > { %v856_v38 = vpop.f32.mrb[9].mxu1  ;;  %995 = vmax.xlane.f32.xlu0 %v994_v37  ;;  %v2601_v40 = vadd.f32 %v1974_v36, %v2557_v14 }
 0x1d7   : > { %v2598_v39 = vadd.f32 %v2557_v14, %v856_v38 }
 0x1d8   : > { %v1003_v48 = vsel %vm975_vm1, %v2601_v40, -inf }
 0x1d9   : > { %v1977_v42 = vpop.f32.mrb[10].mxu1  ;;  %998 = vmax.xlane.f32.xlu1 %v997_v41  ;;  %v1000_v43 = vsel %vm975_vm1, %v2598_v39, -inf }
 0x1da   : > { %v866_v45 = vpop.f32.mrb[11].mxu1  ;;  %1001 = vmax.xlane.f32.xlu0 %v1000_v43  ;;  %v2611_v47 = vadd.f32 %v1977_v42, %v2557_v14 }
 0x1db   : > { %v2608_v46 = vadd.f32 %v2557_v14, %v866_v45 }
 0x1dc   : > { %v1009_v54 = vsel %vm975_vm1, %v2611_v47, -inf }
 0x1dd   : > { %v1980_v49 = vpop.f32.mrb[12].mxu1  ;;  %1004 = vmax.xlane.f32.xlu1 %v1003_v48  ;;  %v1006_v50 = vsel %vm975_vm1, %v2608_v46, -inf }
 0x1de   : > { %v876_v51 = vpop.f32.mrb[13].mxu1  ;;  %1007 = vmax.xlane.f32.xlu0 %v1006_v50  ;;  %v2621_v53 = vadd.f32 %v1980_v49, %v2557_v14 }
 0x1df   : > { %v2618_v52 = vadd.f32 %v2557_v14, %v876_v51 }
 0x1e0   : > { %v1015_v60 = vsel %vm975_vm1, %v2621_v53, -inf }
 0x1e1   : > { %v1983_v55 = vpop.f32.mrb[14].mxu1  ;;  %1010 = vmax.xlane.f32.xlu1 %v1009_v54  ;;  %v1012_v56 = vsel %vm975_vm1, %v2618_v52, -inf }
 0x1e2   : > { %v886_v57 = vpop.f32.mrb[15].mxu1  ;;  %1013 = vmax.xlane.f32.xlu0 %v1012_v56  ;;  %v2631_v59 = vadd.f32 %v1983_v55, %v2557_v14 }
 0x1e3   : > { %v2628_v58 = vadd.f32 %v2557_v14, %v886_v57 }
 0x1e4   : > { %v1021_v2 = vsel %vm975_vm1, %v2631_v59, -inf }
 0x1e5   : > { %v1986_v61 = vpop.f32.mrb[16].mxu1  ;;  %1016 = vmax.xlane.f32.xlu1 %v1015_v60  ;;  %v1018_v62 = vsel %vm975_vm1, %v2628_v58, -inf }
 0x1e6   : > { %v896_v63 = vpop.f32.mrb[17].mxu1  ;;  %1019 = vmax.xlane.f32.xlu0 %v1018_v62  ;;  %v2641_v1 = vadd.f32 %v1986_v61, %v2557_v14 }
 0x1e7   : > { %v2638_v0 = vadd.f32 %v2557_v14, %v896_v63 }
 0x1e8   : > { %v1027_v8 = vsel %vm975_vm1, %v2641_v1, -inf }
 0x1e9   : > { %v1989_v3 = vpop.f32.mrb[18].mxu1  ;;  %1022 = vmax.xlane.f32.xlu1 %v1021_v2  ;;  %v1024_v4 = vsel %vm975_vm1, %v2638_v0, -inf }
 0x1ea   : > { %v906_v5 = vpop.f32.mrb[19].mxu1  ;;  %1025 = vmax.xlane.f32.xlu0 %v1024_v4  ;;  %v2651_v7 = vadd.f32 %v1989_v3, %v2557_v14 }
 0x1eb   : > { %v2648_v6 = vadd.f32 %v2557_v14, %v906_v5 }
 0x1ec   : > { %v1033_v15 = vsel %vm975_vm1, %v2651_v7, -inf }
 0x1ed   : > { %v1992_v9 = vpop.f32.mrb[20].mxu1  ;;  %1028 = vmax.xlane.f32.xlu1 %v1027_v8  ;;  %v1030_v10 = vsel %vm975_vm1, %v2648_v6, -inf }
 0x1ee   : > { %v916_v11 = vpop.f32.mrb[21].mxu1  ;;  %1031 = vmax.xlane.f32.xlu0 %v1030_v10  ;;  %v2661_v13 = vadd.f32 %v1992_v9, %v2557_v14 }
 0x1ef   : > { %v2658_v12 = vadd.f32 %v2557_v14, %v916_v11 }
 0x1f0   : > { %v1039_v24 = vsel %vm975_vm1, %v2661_v13, -inf }
 0x1f1   : > { %v1995_v44 = vpop.f32.mrb[22].mxu1  ;;  %1034 = vmax.xlane.f32.xlu1 %v1033_v15  ;;  %v1036_v18 = vsel %vm975_vm1, %v2658_v12, -inf }
 0x1f2   : > { %v926_v19 = vpop.f32.mrb[23].mxu1  ;;  %1037 = vmax.xlane.f32.xlu0 %v1036_v18  ;;  %v2671_v23 = vadd.f32 %v1995_v44, %v2557_v14 }
 0x1f3   : > { %v2668_v21 = vadd.f32 %v2557_v14, %v926_v19 }
 0x1f4   : > { %v1045_v32 = vsel %vm975_vm1, %v2671_v23, -inf }
 0x1f5   : > { %v1998_v25 = vpop.f32.mrb[24].mxu1  ;;  %1040 = vmax.xlane.f32.xlu1 %v1039_v24  ;;  %v1042_v26 = vsel %vm975_vm1, %v2668_v21, -inf }
 0x1f6   : > { %v936_v29 = vpop.f32.mrb[25].mxu1  ;;  %1043 = vmax.xlane.f32.xlu0 %v1042_v26  ;;  %v2681_v31 = vadd.f32 %v1998_v25, %v2557_v14 }
 0x1f7   : > { %v2678_v30 = vadd.f32 %v2557_v14, %v936_v29 }
 0x1f8   : > { %v1051_v42 = vsel %vm975_vm1, %v2681_v31, -inf }
 0x1f9   : > { %v2001_v35 = vpop.f32.mrb[26].mxu1  ;;  %1046 = vmax.xlane.f32.xlu1 %v1045_v32  ;;  %v1048_v36 = vsel %vm975_vm1, %v2678_v30, -inf }
 0x1fa   : > { %v946_v37 = vpop.f32.mrb[27].mxu1  ;;  %1049 = vmax.xlane.f32.xlu0 %v1048_v36  ;;  %v2691_v41 = vadd.f32 %v2001_v35, %v2557_v14 }
 0x1fb   : > { %v2688_v38 = vadd.f32 %v2557_v14, %v946_v37 }
 0x1fc   : > { %v1057_v51 = vsel %vm975_vm1, %v2691_v41, -inf }
 0x1fd   : > { %v2004_v43 = vpop.f32.mrb[28].mxu1  ;;  %1052 = vmax.xlane.f32.xlu1 %v1051_v42  ;;  %v1054_v45 = vsel %vm975_vm1, %v2688_v38, -inf }
 0x1fe   : > { %v956_v48 = vpop.f32.mrb[29].mxu1  ;;  %1055 = vmax.xlane.f32.xlu0 %v1054_v45  ;;  %v2701_v50 = vadd.f32 %v2004_v43, %v2557_v14 }
 0x1ff   : > { %v2698_v49 = vadd.f32 %v2557_v14, %v956_v48 }
 0x200   : > { %v1063_v61 = vsel %vm975_vm1, %v2701_v50, -inf }
 0x201   : > { %v2007_v54 = vpop.f32.mrb[30].mxu1  ;;  %1058 = vmax.xlane.f32.xlu1 %v1057_v51  ;;  %v1060_v55 = vsel %vm975_vm1, %v2698_v49, -inf }
 0x202   : > { %v2708_v56 = vadd.f32 %v2007_v54, %v2557_v14  ;;  %v966_v57 = vpop.f32.mrb[31].mxu1  ;;  %1061 = vmax.xlane.f32.xlu0 %v1060_v55 }
 0x203   : > { %v2711_v60 = vadd.f32 %v2557_v14, %v966_v57 }
 0x204   : > { %v1069_v63 = vsel %vm975_vm1, %v2708_v56, -inf }
 0x205   : > { %1064 = vmax.xlane.f32.xlu1 %v1063_v61  ;;  %v1066_v62 = vsel %vm975_vm1, %v2711_v60, -inf }
 0x206   : > { %1067 = vmax.xlane.f32.xlu0 %v1066_v62 }
 0x209   : > { %1070 = vmax.xlane.f32.xlu1 %v1069_v63 }
 0x256   : > { %v981_v2 = vpop.xlane.xlu0 %980 }
 0x257   : > { %v2720_v3 = vsub.f32 %v2560_v16, %v981_v2 }
 0x259   : > { %v1106_v4 = vmul.f32 1.442695, %v2720_v3 }
 0x25a   : > { %v987_v14 = vpop.xlane.xlu1 %986  ;;  %v978_v5 = vpop.xlane.xlu0 %977 }
 0x25b   : > { %2112 = vpow2.f32 %v1106_v4  ;;  %v2724_v8 = vsub.f32 %v2568_v20, %v987_v14  ;;  %v2727_v9 = vsub.f32 %v2563_v17, %v978_v5 }
 0x25d   : > { %v1110_v10 = vmul.f32 1.442695, %v2724_v8  ;;  %v1104_v11 = vmul.f32 1.442695, %v2727_v9 }
 0x25e   : > { %v984_v15 = vpop.xlane.xlu1 %983 }
 0x25f   : > { %2114 = vpow2.f32 %v1110_v10  ;;  %v2732_v16 = vsub.f32 %v2571_v22, %v984_v15  ;;  %v990_v44 = vpop.xlane.xlu0 %989 }
 0x260   : > { %2116 = vpow2.f32 %v1104_v11  ;;  %v2735_v18 = vsub.f32 %v2578_v27, %v990_v44 }
 0x261   : > { %v1108_v20 = vmul.f32 1.442695, %v2732_v16 }
 0x262   : > { %v1112_v19 = vmul.f32 1.442695, %v2735_v18  ;;  %v993_v17 = vpop.xlane.xlu1 %992 }
 0x263   : > { %2118 = vpow2.f32 %v1108_v20  ;;  %v2740_v24 = vsub.f32 %v2581_v28, %v993_v17  ;;  %v996_v25 = vpop.xlane.xlu0 %995 }
 0x264   : > { %v2743_v26 = vsub.f32 %v2588_v33, %v996_v25  ;;  %2120 = vpow2.f32 %v1112_v19 }
 0x265   : > { %v2113_v22 = vpop.eup %2112  ;;  %v1114_v29 = vmul.f32 1.442695, %v2740_v24 }
 0x266   : > { %v1116_v27 = vmul.f32 1.442695, %v2743_v26  ;;  %v999_v32 = vpop.xlane.xlu1 %998  ;;  %v1171_v35 = vsel %vm975_vm1, %v2113_v22, 0.0 }
 0x267   : > { %2122 = vpow2.f32 %v1114_v29  ;;  %v2749_v36 = vsub.f32 %v2591_v34, %v999_v32  ;;  %1172 = vadd.xlane.f32.xlu1 %v1171_v35  ;;  %v1002_v28 = vpop.xlane.xlu0 %1001 }
 0x268   : > { %v2752_v37 = vsub.f32 %v2598_v39, %v1002_v28  ;;  %2124 = vpow2.f32 %v1116_v27 }
 0x269   : > { %v2115_v33 = vpop.eup %2114  ;;  %v1118_v42 = vmul.f32 1.442695, %v2749_v36 }
 0x26a   : > { %v2117_v43 = vpop.eup %2116  ;;  %v1120_v45 = vmul.f32 1.442695, %v2752_v37  ;;  %v1005_v48 = vpop.xlane.xlu1 %1004  ;;  %v1177_v51 = vsel %vm975_vm1, %v2115_v33, 0.0 }
 0x26b   : > { %2126 = vpow2.f32 %v1118_v42  ;;  %v2758_v54 = vsub.f32 %v2601_v40, %v1005_v48  ;;  %1178 = vadd.xlane.f32.xlu1 %v1177_v51  ;;  %v1168_v34 = vsel %vm975_vm1, %v2117_v43, 0.0  ;;  %v1008_v55 = vpop.xlane.xlu0 %1007 }
 0x26c   : > { %1169 = vadd.xlane.f32.xlu0 %v1168_v34  ;;  %v2762_v39 = vsub.f32 %v2608_v46, %v1008_v55  ;;  %2128 = vpow2.f32 %v1120_v45 }
 0x26d   : > { %v2119_v57 = vpop.eup %2118  ;;  %v1122_v61 = vmul.f32 1.442695, %v2758_v54 }
 0x26e   : > { %v1124_v62 = vmul.f32 1.442695, %v2762_v39  ;;  %v1011_v63 = vpop.xlane.xlu1 %1010  ;;  %v1174_v2 = vsel %vm975_vm1, %v2119_v57, 0.0  ;;  %v2121_v14 = vpop.eup %2120 }
 0x26f   : > { %2130 = vpow2.f32 %v1122_v61  ;;  %v2768_v40 = vsub.f32 %v2611_v47, %v1011_v63  ;;  %v1014_v4 = vpop.xlane.xlu0 %1013  ;;  %v1180_v47 = vsel %vm975_vm1, %v2121_v14, 0.0 }
 0x270   : > { %1175 = vadd.xlane.f32.xlu0 %v1174_v2  ;;  %v2771_v5 = vsub.f32 %v2618_v52, %v1014_v4  ;;  %2132 = vpow2.f32 %v1124_v62 }
 0x271   : > { %v2123_v46 = vpop.eup %2122  ;;  %v1126_v10 = vmul.f32 1.442695, %v2768_v40 }
 0x272   : > { %v1128_v11 = vmul.f32 1.442695, %v2771_v5  ;;  %v1017_v15 = vpop.xlane.xlu1 %1016  ;;  %v1183_v44 = vsel %vm975_vm1, %v2123_v46, 0.0  ;;  %v2125_v17 = vpop.eup %2124 }
 0x273   : > { %2134 = vpow2.f32 %v1126_v10  ;;  %v2777_v20 = vsub.f32 %v2621_v53, %v1017_v15  ;;  %1184 = vadd.xlane.f32.xlu1 %v1183_v44  ;;  %v1020_v19 = vpop.xlane.xlu0 %1019  ;;  %v1186_v35 = vsel %vm975_vm1, %v2125_v17, 0.0 }
 0x274   : > { %1181 = vadd.xlane.f32.xlu0 %v1180_v47  ;;  %v2781_v52 = vsub.f32 %v2628_v58, %v1020_v19  ;;  %2136 = vpow2.f32 %v1128_v11 }
 0x275   : > { %v2127_v25 = vpop.eup %2126  ;;  %v1130_v22 = vmul.f32 1.442695, %v2777_v20 }
 0x276   : > { %v1132_v29 = vmul.f32 1.442695, %v2781_v52  ;;  %v1023_v27 = vpop.xlane.xlu1 %1022  ;;  %v1189_v32 = vsel %vm975_vm1, %v2127_v25, 0.0  ;;  %v2129_v33 = vpop.eup %2128 }
 0x277   : > { %2138 = vpow2.f32 %v1130_v22  ;;  %v2787_v53 = vsub.f32 %v2631_v59, %v1023_v27  ;;  %1190 = vadd.xlane.f32.xlu1 %v1189_v32  ;;  %v1026_v28 = vpop.xlane.xlu0 %1025  ;;  %v1192_v34 = vsel %vm975_vm1, %v2129_v33, 0.0 }
 0x278   : > { %1187 = vadd.xlane.f32.xlu0 %v1186_v35  ;;  %v2791_v58 = vsub.f32 %v2638_v0, %v1026_v28  ;;  %2140 = vpow2.f32 %v1132_v29 }
 0x279   : > { %v2131_v42 = vpop.eup %2130  ;;  %v1134_v43 = vmul.f32 1.442695, %v2787_v53 }
 0x27a   : > { %v1136_v45 = vmul.f32 1.442695, %v2791_v58  ;;  %v1029_v48 = vpop.xlane.xlu1 %1028  ;;  %v1195_v51 = vsel %vm975_vm1, %v2131_v42, 0.0  ;;  %v2133_v57 = vpop.eup %2132 }
 0x27b   : > { %2142 = vpow2.f32 %v1134_v43  ;;  %v2797_v59 = vsub.f32 %v2641_v1, %v1029_v48  ;;  %1196 = vadd.xlane.f32.xlu1 %v1195_v51  ;;  %v1032_v55 = vpop.xlane.xlu0 %1031  ;;  %v1198_v14 = vsel %vm975_vm1, %v2133_v57, 0.0 }
 0x27c   : > { %1193 = vadd.xlane.f32.xlu0 %v1192_v34  ;;  %v2801_v0 = vsub.f32 %v2648_v6, %v1032_v55  ;;  %2144 = vpow2.f32 %v1136_v45 }
 0x27d   : > { %v2135_v61 = vpop.eup %2134  ;;  %v1138_v62 = vmul.f32 1.442695, %v2797_v59 }
 0x27e   : > { %v1140_v63 = vmul.f32 1.442695, %v2801_v0  ;;  %v1035_v2 = vpop.xlane.xlu1 %1034  ;;  %v1201_v4 = vsel %vm975_vm1, %v2135_v61, 0.0  ;;  %v2137_v10 = vpop.eup %2136 }
 0x27f   : > { %2146 = vpow2.f32 %v1138_v62  ;;  %v2807_v1 = vsub.f32 %v2651_v7, %v1035_v2  ;;  %1202 = vadd.xlane.f32.xlu1 %v1201_v4  ;;  %v1038_v46 = vpop.xlane.xlu0 %1037  ;;  %v1204_v17 = vsel %vm975_vm1, %v2137_v10, 0.0 }
 0x280   : > { %1199 = vadd.xlane.f32.xlu0 %v1198_v14  ;;  %v2811_v6 = vsub.f32 %v2658_v12, %v1038_v46  ;;  %2148 = vpow2.f32 %v1140_v63 }
 0x281   : > { %v2139_v11 = vpop.eup %2138  ;;  %v1142_v15 = vmul.f32 1.442695, %v2807_v1 }
 0x282   : > { %v1144_v44 = vmul.f32 1.442695, %v2811_v6  ;;  %v1041_v47 = vpop.xlane.xlu1 %1040  ;;  %v1207_v19 = vsel %vm975_vm1, %v2139_v11, 0.0  ;;  %v2141_v22 = vpop.eup %2140 }
 0x283   : > { %2150 = vpow2.f32 %v1142_v15  ;;  %v2817_v7 = vsub.f32 %v2661_v13, %v1041_v47  ;;  %1208 = vadd.xlane.f32.xlu1 %v1207_v19  ;;  %v1044_v25 = vpop.xlane.xlu0 %1043  ;;  %v1210_v33 = vsel %vm975_vm1, %v2141_v22, 0.0 }
 0x284   : > { %1205 = vadd.xlane.f32.xlu0 %v1204_v17  ;;  %v2821_v12 = vsub.f32 %v2668_v21, %v1044_v25  ;;  %2152 = vpow2.f32 %v1144_v44 }
 0x285   : > { %v2143_v29 = vpop.eup %2142  ;;  %v1146_v27 = vmul.f32 1.442695, %v2817_v7 }
 0x286   : > { %v1148_v32 = vmul.f32 1.442695, %v2821_v12  ;;  %v1047_v35 = vpop.xlane.xlu1 %1046  ;;  %v1213_v28 = vsel %vm975_vm1, %v2143_v29, 0.0  ;;  %v2145_v43 = vpop.eup %2144 }
 0x287   : > { %2154 = vpow2.f32 %v1146_v27  ;;  %v2827_v13 = vsub.f32 %v2671_v23, %v1047_v35  ;;  %1214 = vadd.xlane.f32.xlu1 %v1213_v28  ;;  %v1050_v42 = vpop.xlane.xlu0 %1049  ;;  %v1216_v57 = vsel %vm975_vm1, %v2145_v43, 0.0 }
 0x288   : > { %1211 = vadd.xlane.f32.xlu0 %v1210_v33  ;;  %v2831_v21 = vsub.f32 %v2678_v30, %v1050_v42  ;;  %2156 = vpow2.f32 %v1148_v32 }
 0x289   : > { %v2147_v45 = vpop.eup %2146  ;;  %v1150_v48 = vmul.f32 1.442695, %v2827_v13 }
 0x28a   : > { %v1152_v51 = vmul.f32 1.442695, %v2831_v21  ;;  %v1053_v34 = vpop.xlane.xlu1 %1052  ;;  %v1219_v55 = vsel %vm975_vm1, %v2147_v45, 0.0  ;;  %v2149_v62 = vpop.eup %2148 }
 0x28b   : > { %2158 = vpow2.f32 %v1150_v48  ;;  %v2837_v23 = vsub.f32 %v2681_v31, %v1053_v34  ;;  %1220 = vadd.xlane.f32.xlu1 %v1219_v55  ;;  %v1056_v61 = vpop.xlane.xlu0 %1055  ;;  %v1222_v10 = vsel %vm975_vm1, %v2149_v62, 0.0 }
 0x28c   : > { %1217 = vadd.xlane.f32.xlu0 %v1216_v57  ;;  %v2841_v30 = vsub.f32 %v2688_v38, %v1056_v61  ;;  %2160 = vpow2.f32 %v1152_v51 }
 0x28d   : > { %v2151_v63 = vpop.eup %2150  ;;  %v1154_v2 = vmul.f32 1.442695, %v2837_v23 }
 0x28e   : > { %v1156_v4 = vmul.f32 1.442695, %v2841_v30  ;;  %v1059_v14 = vpop.xlane.xlu1 %1058  ;;  %v1225_v46 = vsel %vm975_vm1, %v2151_v63, 0.0  ;;  %v2153_v15 = vpop.eup %2152 }
 0x28f   : > { %2162 = vpow2.f32 %v1154_v2  ;;  %v2847_v31 = vsub.f32 %v2691_v41, %v1059_v14  ;;  %1226 = vadd.xlane.f32.xlu1 %v1225_v46  ;;  %v1062_v11 = vpop.xlane.xlu0 %1061  ;;  %v1228_v22 = vsel %vm975_vm1, %v2153_v15, 0.0 }
 0x290   : > { %1223 = vadd.xlane.f32.xlu0 %v1222_v10  ;;  %v2851_v38 = vsub.f32 %v2698_v49, %v1062_v11  ;;  %2164 = vpow2.f32 %v1156_v4 }
 0x291   : > { %v2155_v44 = vpop.eup %2154  ;;  %v1158_v47 = vmul.f32 1.442695, %v2847_v31 }
 0x292   : > { %v1160_v19 = vmul.f32 1.442695, %v2851_v38  ;;  %v1065_v17 = vpop.xlane.xlu1 %1064  ;;  %v1231_v25 = vsel %vm975_vm1, %v2155_v44, 0.0  ;;  %v2157_v27 = vpop.eup %2156 }
 0x293   : > { %2166 = vpow2.f32 %v1158_v47  ;;  %v2857_v41 = vsub.f32 %v2701_v50, %v1065_v17  ;;  %1232 = vadd.xlane.f32.xlu1 %v1231_v25  ;;  %v1068_v29 = vpop.xlane.xlu0 %1067  ;;  %v1234_v43 = vsel %vm975_vm1, %v2157_v27, 0.0 }
 0x294   : > { %1229 = vadd.xlane.f32.xlu0 %v1228_v22  ;;  %v2861_v49 = vsub.f32 %v2711_v60, %v1068_v29  ;;  %2168 = vpow2.f32 %v1160_v19 }
 0x295   : > { %v2159_v32 = vpop.eup %2158  ;;  %v1162_v35 = vmul.f32 1.442695, %v2857_v41 }
 0x296   : > { %v1164_v28 = vmul.f32 1.442695, %v2861_v49  ;;  %v1071_v33 = vpop.xlane.xlu1 %1070  ;;  %v1237_v42 = vsel %vm975_vm1, %v2159_v32, 0.0  ;;  %v2161_v45 = vpop.eup %2160 }
 0x297   : > { %2170 = vpow2.f32 %v1162_v35  ;;  %v2867_v50 = vsub.f32 %v2708_v56, %v1071_v33  ;;  %1238 = vadd.xlane.f32.xlu1 %v1237_v42  ;;  %v1240_v34 = vsel %vm975_vm1, %v2161_v45, 0.0 }
 0x298   : > { %1235 = vadd.xlane.f32.xlu0 %v1234_v43  ;;  %2172 = vpow2.f32 %v1164_v28 }
 0x299   : > { %v2163_v60 = vpop.eup %2162  ;;  %v1166_v48 = vmul.f32 1.442695, %v2867_v50 }
 0x29a   : > { %v1243_v51 = vsel %vm975_vm1, %v2163_v60, 0.0  ;;  %v2165_v55 = vpop.eup %2164 }
 0x29b   : > { %2174 = vpow2.f32 %v1166_v48  ;;  %1244 = vadd.xlane.f32.xlu1 %v1243_v51  ;;  %v1246_v61 = vsel %vm975_vm1, %v2165_v55, 0.0 }
 0x29c   : > { %1241 = vadd.xlane.f32.xlu0 %v1240_v34 }
 0x29d   : > { %v2167_v57 = vpop.eup %2166 }
 0x29e   : > { %v1249_v56 = vsel %vm975_vm1, %v2167_v57, 0.0  ;;  %v2169_v62 = vpop.eup %2168 }
 0x29f   : > { %1250 = vadd.xlane.f32.xlu1 %v1249_v56  ;;  %v1252_v4 = vsel %vm975_vm1, %v2169_v62, 0.0 }
 0x2a0   : > { %1247 = vadd.xlane.f32.xlu0 %v1246_v61 }
 0x2a1   : > { %v2171_v63 = vpop.eup %2170 }
 0x2a2   : > { %v1255_v2 = vsel %vm975_vm1, %v2171_v63, 0.0  ;;  %v2173_v14 = vpop.eup %2172 }
 0x2a3   : > { %1256 = vadd.xlane.f32.xlu1 %v1255_v2  ;;  %v1258_v11 = vsel %vm975_vm1, %v2173_v14, 0.0 }
 0x2a4   : > { %1253 = vadd.xlane.f32.xlu0 %v1252_v4 }
 0x2a5   : > { %v2175_v46 = vpop.eup %2174 }
 0x2a6   : > { %v1261_v10 = vsel %vm975_vm1, %v2175_v46, 0.0 }
 0x2a7   : > { %1262 = vadd.xlane.f32.xlu1 %v1261_v10 }
 0x2a8   : > { %1259 = vadd.xlane.f32.xlu0 %v1258_v11 }
 0x2f4   : > { %v1173_v15 = vpop.xlane.xlu1 %1172 }
 0x2f5   : > { %2176 = vlog2.f32 %v1173_v15 }
 0x2f8   : > { %v1179_v44 = vpop.xlane.xlu1 %1178 }
 0x2f9   : > { %2178 = vlog2.f32 %v1179_v44  ;;  %v1170_v47 = vpop.xlane.xlu0 %1169 }
 0x2fa   : > { %2180 = vlog2.f32 %v1170_v47 }
 0x2fd   : > { %v1176_v19 = vpop.xlane.xlu0 %1175 }
 0x2fe   : > { %2182 = vlog2.f32 %v1176_v19 }
 0x2ff   : > { %v2177_v17 = vpop.eup %2176 }
 0x300   : > { %v1267_v25 = vmul.f32 0.6931472, %v2177_v17  ;;  %v1185_v22 = vpop.xlane.xlu1 %1184 }
 0x301   : > { %2184 = vlog2.f32 %v1185_v22  ;;  %v1182_v29 = vpop.xlane.xlu0 %1181 }
 0x302   : > { %v1329_v27 = vsub.f32 %v2720_v3, %v1267_v25  ;;  %2186 = vlog2.f32 %v1182_v29 }
 0x303   : > { %v2179_v32 = vpop.eup %2178 }
 0x304   : > { %v2181_v35 = vpop.eup %2180  ;;  %1361 = vst.msk [vmem:[%s2881_s12 + $0x8] sm:$0xff] %vm975_vm1, %v1329_v27  ;;  %v1271_v28 = vmul.f32 0.6931472, %v2179_v32  ;;  %v1191_v33 = vpop.xlane.xlu1 %1190 }
 0x305   : > { %v1265_v42 = vmul.f32 0.6931472, %v2181_v35  ;;  %2188 = vlog2.f32 %v1191_v33  ;;  %v1188_v43 = vpop.xlane.xlu0 %1187 }
 0x306   : > { %v1331_v45 = vsub.f32 %v2724_v8, %v1271_v28  ;;  %2190 = vlog2.f32 %v1188_v43 }
 0x307   : > { %v1328_v3 = vsub.f32 %v2727_v9, %v1265_v42 }
 0x308   : > { %v2183_v60 = vpop.eup %2182  ;;  %1363 = vst.msk [vmem:[%s2881_s12 + $0x18] sm:$0xff] %vm975_vm1, %v1331_v45  ;;  %v1197_v48 = vpop.xlane.xlu1 %1196 }
 0x309   : > { %1360 = vst.msk [vmem:[%s2881_s12] sm:$0xff] %vm975_vm1, %v1328_v3  ;;  %v1269_v51 = vmul.f32 0.6931472, %v2183_v60  ;;  %2192 = vlog2.f32 %v1197_v48  ;;  %v1194_v34 = vpop.xlane.xlu0 %1193 }
 0x30a   : > { %2194 = vlog2.f32 %v1194_v34 }
 0x30b   : > { %v2185_v55 = vpop.eup %2184  ;;  %v1330_v57 = vsub.f32 %v2732_v16, %v1269_v51 }
 0x30c   : > { %v2187_v8 = vpop.eup %2186  ;;  %v1275_v56 = vmul.f32 0.6931472, %v2185_v55  ;;  %v1203_v61 = vpop.xlane.xlu1 %1202 }
 0x30d   : > { %1362 = vst.msk [vmem:[%s2881_s12 + $0x10] sm:$0xff] %vm975_vm1, %v1330_v57  ;;  %v1273_v9 = vmul.f32 0.6931472, %v2187_v8  ;;  %2196 = vlog2.f32 %v1203_v61  ;;  %v1200_v62 = vpop.xlane.xlu0 %1199 }
 0x30e   : > { %v1333_v63 = vsub.f32 %v2740_v24, %v1275_v56  ;;  %2198 = vlog2.f32 %v1200_v62 }
 0x30f   : > { %v2189_v2 = vpop.eup %2188  ;;  %v1332_v4 = vsub.f32 %v2735_v18, %v1273_v9 }
 0x310   : > { %v2191_v14 = vpop.eup %2190  ;;  %1365 = vst.msk [vmem:[%s2881_s12 + $0x28] sm:$0xff] %vm975_vm1, %v1333_v63  ;;  %v1279_v16 = vmul.f32 0.6931472, %v2189_v2  ;;  %v1209_v46 = vpop.xlane.xlu1 %1208 }
 0x311   : > { %1364 = vst.msk [vmem:[%s2881_s12 + $0x20] sm:$0xff] %vm975_vm1, %v1332_v4  ;;  %v1277_v10 = vmul.f32 0.6931472, %v2191_v14  ;;  %2200 = vlog2.f32 %v1209_v46  ;;  %v1206_v11 = vpop.xlane.xlu0 %1205 }
 0x312   : > { %v1335_v15 = vsub.f32 %v2749_v36, %v1279_v16  ;;  %2202 = vlog2.f32 %v1206_v11 }
 0x313   : > { %v2193_v24 = vpop.eup %2192  ;;  %v1334_v44 = vsub.f32 %v2743_v26, %v1277_v10 }
 0x314   : > { %v2195_v47 = vpop.eup %2194  ;;  %1367 = vst.msk [vmem:[%s2881_s12 + $0x38] sm:$0xff] %vm975_vm1, %v1335_v15  ;;  %v1283_v18 = vmul.f32 0.6931472, %v2193_v24  ;;  %v1215_v19 = vpop.xlane.xlu1 %1214 }
 0x315   : > { %1366 = vst.msk [vmem:[%s2881_s12 + $0x30] sm:$0xff] %vm975_vm1, %v1334_v44  ;;  %v1281_v17 = vmul.f32 0.6931472, %v2195_v47  ;;  %2204 = vlog2.f32 %v1215_v19  ;;  %v1212_v25 = vpop.xlane.xlu0 %1211 }
 0x316   : > { %v1337_v22 = vsub.f32 %v2758_v54, %v1283_v18  ;;  %2206 = vlog2.f32 %v1212_v25 }
 0x317   : > { %v2197_v36 = vpop.eup %2196  ;;  %v1336_v29 = vsub.f32 %v2752_v37, %v1281_v17 }
 0x318   : > { %v2199_v27 = vpop.eup %2198  ;;  %1369 = vst.msk [vmem:[%s2881_s12 + $0x48] sm:$0xff] %vm975_vm1, %v1337_v22  ;;  %v1287_v26 = vmul.f32 0.6931472, %v2197_v36  ;;  %v1221_v32 = vpop.xlane.xlu1 %1220 }
 0x319   : > { %1368 = vst.msk [vmem:[%s2881_s12 + $0x40] sm:$0xff] %vm975_vm1, %v1336_v29  ;;  %v1285_v35 = vmul.f32 0.6931472, %v2199_v27  ;;  %2208 = vlog2.f32 %v1221_v32  ;;  %v1218_v28 = vpop.xlane.xlu0 %1217 }
 0x31a   : > { %v1339_v33 = vsub.f32 %v2768_v40, %v1287_v26  ;;  %2210 = vlog2.f32 %v1218_v28 }
 0x31b   : > { %v2201_v54 = vpop.eup %2200  ;;  %v1338_v42 = vsub.f32 %v2762_v39, %v1285_v35 }
 0x31c   : > { %v2203_v43 = vpop.eup %2202  ;;  %1371 = vst.msk [vmem:[%s2881_s12 + $0x58] sm:$0xff] %vm975_vm1, %v1339_v33  ;;  %v1291_v37 = vmul.f32 0.6931472, %v2201_v54  ;;  %v1227_v45 = vpop.xlane.xlu1 %1226 }
 0x31d   : > { %1370 = vst.msk [vmem:[%s2881_s12 + $0x50] sm:$0xff] %vm975_vm1, %v1338_v42  ;;  %v1289_v3 = vmul.f32 0.6931472, %v2203_v43  ;;  %2212 = vlog2.f32 %v1227_v45  ;;  %v1224_v60 = vpop.xlane.xlu0 %1223 }
 0x31e   : > { %v1341_v48 = vsub.f32 %v2777_v20, %v1291_v37  ;;  %2214 = vlog2.f32 %v1224_v60 }
 0x31f   : > { %v2205_v40 = vpop.eup %2204  ;;  %v1340_v51 = vsub.f32 %v2771_v5, %v1289_v3 }
 0x320   : > { %v2207_v34 = vpop.eup %2206  ;;  %1373 = vst.msk [vmem:[%s2881_s12 + $0x68] sm:$0xff] %vm975_vm1, %v1341_v48  ;;  %v1295_v39 = vmul.f32 0.6931472, %v2205_v40  ;;  %v1233_v55 = vpop.xlane.xlu1 %1232 }
 0x321   : > { %1372 = vst.msk [vmem:[%s2881_s12 + $0x60] sm:$0xff] %vm975_vm1, %v1340_v51  ;;  %v1293_v57 = vmul.f32 0.6931472, %v2207_v34  ;;  %2216 = vlog2.f32 %v1233_v55  ;;  %v1230_v8 = vpop.xlane.xlu0 %1229 }
 0x322   : > { %v1343_v56 = vsub.f32 %v2787_v53, %v1295_v39  ;;  %2218 = vlog2.f32 %v1230_v8 }
 0x323   : > { %v2209_v20 = vpop.eup %2208  ;;  %v1342_v61 = vsub.f32 %v2781_v52, %v1293_v57 }
 0x324   : > { %v2211_v9 = vpop.eup %2210  ;;  %1375 = vst.msk [vmem:[%s2881_s12 + $0x78] sm:$0xff] %vm975_vm1, %v1343_v56  ;;  %v1299_v5 = vmul.f32 0.6931472, %v2209_v20  ;;  %v1239_v62 = vpop.xlane.xlu1 %1238 }
 0x325   : > { %1374 = vst.msk [vmem:[%s2881_s12 + $0x70] sm:$0xff] %vm975_vm1, %v1342_v61  ;;  %v1297_v63 = vmul.f32 0.6931472, %v2211_v9  ;;  %2220 = vlog2.f32 %v1239_v62  ;;  %v1236_v2 = vpop.xlane.xlu0 %1235 }
 0x326   : > { %v1345_v4 = vsub.f32 %v2797_v59, %v1299_v5  ;;  %2222 = vlog2.f32 %v1236_v2 }
 0x327   : > { %v2213_v53 = vpop.eup %2212  ;;  %v1344_v14 = vsub.f32 %v2791_v58, %v1297_v63 }
 0x328   : > { %v2215_v16 = vpop.eup %2214  ;;  %1377 = vst.msk [vmem:[%s2881_s12 + $0x88] sm:$0xff] %vm975_vm1, %v1345_v4  ;;  %v1303_v52 = vmul.f32 0.6931472, %v2213_v53  ;;  %v1245_v46 = vpop.xlane.xlu1 %1244 }
 0x329   : > { %1376 = vst.msk [vmem:[%s2881_s12 + $0x80] sm:$0xff] %vm975_vm1, %v1344_v14  ;;  %v1301_v10 = vmul.f32 0.6931472, %v2215_v16  ;;  %2224 = vlog2.f32 %v1245_v46  ;;  %v1242_v11 = vpop.xlane.xlu0 %1241 }
 0x32a   : > { %v1347_v15 = vsub.f32 %v2807_v1, %v1303_v52  ;;  %2226 = vlog2.f32 %v1242_v11 }
 0x32b   : > { %v2217_v59 = vpop.eup %2216  ;;  %v1346_v24 = vsub.f32 %v2801_v0, %v1301_v10 }
 0x32c   : > { %v2219_v44 = vpop.eup %2218  ;;  %1379 = vst.msk [vmem:[%s2881_s12 + $0x98] sm:$0xff] %vm975_vm1, %v1347_v15  ;;  %v1307_v58 = vmul.f32 0.6931472, %v2217_v59  ;;  %v1251_v47 = vpop.xlane.xlu1 %1250 }
 0x32d   : > { %1378 = vst.msk [vmem:[%s2881_s12 + $0x90] sm:$0xff] %vm975_vm1, %v1346_v24  ;;  %v1305_v18 = vmul.f32 0.6931472, %v2219_v44  ;;  %2228 = vlog2.f32 %v1251_v47  ;;  %v1248_v19 = vpop.xlane.xlu0 %1247 }
 0x32e   : > { %v1349_v17 = vsub.f32 %v2817_v7, %v1307_v58  ;;  %2230 = vlog2.f32 %v1248_v19 }
 0x32f   : > { %v2221_v1 = vpop.eup %2220  ;;  %v1348_v25 = vsub.f32 %v2811_v6, %v1305_v18 }
 0x330   : > { %v2223_v22 = vpop.eup %2222  ;;  %1381 = vst.msk [vmem:[%s2881_s12 + $0xa8] sm:$0xff] %vm975_vm1, %v1349_v17  ;;  %v1311_v0 = vmul.f32 0.6931472, %v2221_v1  ;;  %v1257_v36 = vpop.xlane.xlu1 %1256 }
 0x331   : > { %1380 = vst.msk [vmem:[%s2881_s12 + $0xa0] sm:$0xff] %vm975_vm1, %v1348_v25  ;;  %v1309_v29 = vmul.f32 0.6931472, %v2223_v22  ;;  %2232 = vlog2.f32 %v1257_v36  ;;  %v1254_v27 = vpop.xlane.xlu0 %1253 }
 0x332   : > { %v1351_v26 = vsub.f32 %v2827_v13, %v1311_v0  ;;  %2234 = vlog2.f32 %v1254_v27 }
 0x333   : > { %v2225_v7 = vpop.eup %2224  ;;  %v1350_v32 = vsub.f32 %v2821_v12, %v1309_v29 }
 0x334   : > { %v2227_v6 = vpop.eup %2226  ;;  %1383 = vst.msk [vmem:[%s2881_s12 + $0xb8] sm:$0xff] %vm975_vm1, %v1351_v26  ;;  %v1315_v35 = vmul.f32 0.6931472, %v2225_v7  ;;  %v1263_v28 = vpop.xlane.xlu1 %1262 }
 0x335   : > { %1382 = vst.msk [vmem:[%s2881_s12 + $0xb0] sm:$0xff] %vm975_vm1, %v1350_v32  ;;  %v1313_v33 = vmul.f32 0.6931472, %v2227_v6  ;;  %2236 = vlog2.f32 %v1263_v28  ;;  %v1260_v54 = vpop.xlane.xlu0 %1259 }
 0x336   : > { %v1353_v13 = vsub.f32 %v2837_v23, %v1315_v35  ;;  %2238 = vlog2.f32 %v1260_v54 }
 0x337   : > { %v2229_v42 = vpop.eup %2228  ;;  %v1352_v43 = vsub.f32 %v2831_v21, %v1313_v33 }
 0x338   : > { %v2231_v12 = vpop.eup %2230  ;;  %1385 = vst.msk [vmem:[%s2881_s12 + $0xc8] sm:$0xff] %vm975_vm1, %v1353_v13  ;;  %v1319_v37 = vmul.f32 0.6931472, %v2229_v42 }
 0x339   : > { %1384 = vst.msk [vmem:[%s2881_s12 + $0xc0] sm:$0xff] %vm975_vm1, %v1352_v43  ;;  %v1317_v45 = vmul.f32 0.6931472, %v2231_v12 }
 0x33a   : > { %v1355_v3 = vsub.f32 %v2847_v31, %v1319_v37 }
 0x33b   : > { %v2233_v60 = vpop.eup %2232  ;;  %v1354_v48 = vsub.f32 %v2841_v30, %v1317_v45 }
 0x33c   : > { %v2235_v23 = vpop.eup %2234  ;;  %1387 = vst.msk [vmem:[%s2881_s12 + $0xd8] sm:$0xff] %vm975_vm1, %v1355_v3  ;;  %v1323_v21 = vmul.f32 0.6931472, %v2233_v60 }
 0x33d   : > { %1386 = vst.msk [vmem:[%s2881_s12 + $0xd0] sm:$0xff] %vm975_vm1, %v1354_v48  ;;  %v1321_v40 = vmul.f32 0.6931472, %v2235_v23 }
 0x33e   : > { %v1357_v51 = vsub.f32 %v2857_v41, %v1323_v21 }
 0x33f   : > { %v2237_v34 = vpop.eup %2236  ;;  %v1356_v39 = vsub.f32 %v2851_v38, %v1321_v40  ;;  %1398 = sbr.rel (!%p2383_p4) target bundleno = 894 (0x37e), region = 44 }
 0x340   : > { %v2239_v55 = vpop.eup %2238  ;;  %1389 = vst.msk [vmem:[%s2881_s12 + $0xe8] sm:$0xff] %vm975_vm1, %v1357_v51  ;;  %v1327_v31 = vmul.f32 0.6931472, %v2237_v34 }
 0x341   : > { %1388 = vst.msk [vmem:[%s2881_s12 + $0xe0] sm:$0xff] %vm975_vm1, %v1356_v39  ;;  %v1325_v30 = vmul.f32 0.6931472, %v2239_v55 }
 0x342   : > { %v1359_v57 = vsub.f32 %v2867_v50, %v1327_v31 }
 0x343   : > { %v1358_v8 = vsub.f32 %v2861_v49, %v1325_v30 }
 0x344   : > { %1391 = vst.msk [vmem:[%s2881_s12 + $0xf8] sm:$0xff] %vm975_vm1, %v1359_v57 }
 0x345   : > { %1390 = vst.msk [vmem:[%s2881_s12 + $0xf0] sm:$0xff] %vm975_vm1, %v1358_v8 }
 0x346   : > { %s3133_s18 = smov (!%p1401_p8, %s1400_s18), 32 }
 0x347   : > { %s1806_s17 = sshll.u32 %s3133_s18, 7 }
 0x348   : > { %p1809_p9 = scmp.eq.s32.totalorder %s1806_s17, 0 }
 0x349   : > { %s2991_s20 = sshrl.u32 (!%p1809_p9), %s3133_s18, 5 }
 0x34a   : > { %1409 = sbr.rel (%p1809_p9) target bundleno = 894 (0x37e), region = 48  ;;  %p1810_p10 = scmp.le.s32.totalorder (!%p1809_p9), %s2991_s20, 0 }
 0x351   : > { %1687 = sbr.rel (%p1810_p10) target bundleno = 873 (0x369), region = 124  ;;  %s3124_s21 = smov (!%p1810_p10), %s2985_s16 }
 0x352   : > { %s3125_s26 = smov (!%p1810_p10), %s2881_s12  ;;  %s3000_s8 = smov (!%p1810_p10), 0  }
 0x353   : > { %s3002_s23 = smov (!%p1810_p10), 0  }
 0x358 LB: >> { %v1533_v38 = vld [vmem:[%s2302_s26] sm:$0xff]  ;;  %v1535_v41 = vld [vmem:[%s2302_s26 + $0x8] sm:$0xff]  ;;  %v1537_v49 = vld [vmem:[%s2302_s26 + $0x10] sm:$0xff]  ;;  %s1597_s24 = sadd.s32 1, %s2306_s8  ;;  %s1527_s23 = sadd.s32 1, %s2310_s23   ;;  %s2310_s23 = sphi %s3002_s23, %s1527_s23   ;;  %s2306_s8 = sphi %s3000_s8, %s3128_s8   ;;  %s2302_s26 = sphi %s3125_s26, %s3127_s26   ;;  %s2298_s21 = sphi %s3124_s21, %s3126_s21  }
 0x359   : >> { %1534 = vst [vmem:[%s2298_s21] sm:$0xff] %v1533_v38  ;;  %1536 = vst [vmem:[%s2298_s21 + $0x8] sm:$0xff] %v1535_v41  ;;  %v1539_v50 = vld [vmem:[%s2302_s26 + $0x18] sm:$0xff]  ;;  %v1541_v56 = vld [vmem:[%s2302_s26 + $0x20] sm:$0xff]  ;;  %p1598_p11 = scmp.ge.s32.totalorder %s1597_s24, %s2991_s20  ;;  %p1526_p12 = scmp.ge.s32.totalorder %s1527_s23, %s2991_s20 }
 0x35a   : >> { %1538 = vst [vmem:[%s2298_s21 + $0x10] sm:$0xff] %v1537_v49  ;;  %v1543_v20 = vld [vmem:[%s2302_s26 + $0x28] sm:$0xff]  ;;  %1540 = vst [vmem:[%s2298_s21 + $0x18] sm:$0xff] %v1539_v50  ;;  %v1545_v61 = vld [vmem:[%s2302_s26 + $0x30] sm:$0xff] }
 0x35b   : >> { %1542 = vst [vmem:[%s2298_s21 + $0x20] sm:$0xff] %v1541_v56  ;;  %1544 = vst [vmem:[%s2298_s21 + $0x28] sm:$0xff] %v1543_v20  ;;  %v1547_v9 = vld [vmem:[%s2302_s26 + $0x38] sm:$0xff]  ;;  %v1549_v5 = vld [vmem:[%s2302_s26 + $0x40] sm:$0xff]  ;;  %s3135_s24 = smov (%p1598_p11, %s1597_s24), 0 }
 0x35c   : >> { %1546 = vst [vmem:[%s2298_s21 + $0x30] sm:$0xff] %v1545_v61  ;;  %1548 = vst [vmem:[%s2298_s21 + $0x38] sm:$0xff] %v1547_v9  ;;  %v1551_v62 = vld [vmem:[%s2302_s26 + $0x48] sm:$0xff]  ;;  %v1553_v63 = vld [vmem:[%s2302_s26 + $0x50] sm:$0xff]  ;;  %s1811_s27 = sshll.u32 %s3135_s24, 8  ;;  %s3128_s8 = smov %s3135_s24 }
 0x35d   : >> { %1550 = vst [vmem:[%s2298_s21 + $0x40] sm:$0xff] %v1549_v5  ;;  %v1555_v2 = vld [vmem:[%s2302_s26 + $0x58] sm:$0xff]  ;;  %1552 = vst [vmem:[%s2298_s21 + $0x48] sm:$0xff] %v1551_v62  ;;  %v1557_v4 = vld [vmem:[%s2302_s26 + $0x60] sm:$0xff]  ;;  %s3058_s28 = scalar_lea.vmem %s2881_s12, %s1811_s27 [#allocation2]   ;;  %s1603_s29 = scalar_lea.vmem %s2985_s16, %s1811_s27  }
 0x35e   : >> { %1554 = vst [vmem:[%s2298_s21 + $0x50] sm:$0xff] %v1553_v63  ;;  %1556 = vst [vmem:[%s2298_s21 + $0x58] sm:$0xff] %v1555_v2  ;;  %v1559_v53 = vld [vmem:[%s2302_s26 + $0x68] sm:$0xff]  ;;  %v1561_v14 = vld [vmem:[%s2302_s26 + $0x70] sm:$0xff] }
 0x35f   : >> { %1558 = vst [vmem:[%s2298_s21 + $0x60] sm:$0xff] %v1557_v4  ;;  %1560 = vst [vmem:[%s2298_s21 + $0x68] sm:$0xff] %v1559_v53  ;;  %v1563_v16 = vld [vmem:[%s2302_s26 + $0x78] sm:$0xff]  ;;  %v1565_v52 = vld [vmem:[%s2302_s26 + $0x80] sm:$0xff] }
 0x360   : >> { %1562 = vst [vmem:[%s2298_s21 + $0x70] sm:$0xff] %v1561_v14  ;;  %v1567_v46 = vld [vmem:[%s2302_s26 + $0x88] sm:$0xff]  ;;  %1564 = vst [vmem:[%s2298_s21 + $0x78] sm:$0xff] %v1563_v16  ;;  %v1569_v10 = vld [vmem:[%s2302_s26 + $0x90] sm:$0xff] }
 0x361   : >> { %1566 = vst [vmem:[%s2298_s21 + $0x80] sm:$0xff] %v1565_v52  ;;  %1568 = vst [vmem:[%s2298_s21 + $0x88] sm:$0xff] %v1567_v46  ;;  %v1571_v11 = vld [vmem:[%s2302_s26 + $0x98] sm:$0xff]  ;;  %v1573_v15 = vld [vmem:[%s2302_s26 + $0xa0] sm:$0xff] }
 0x362   : >> { %1570 = vst [vmem:[%s2298_s21 + $0x90] sm:$0xff] %v1569_v10  ;;  %1572 = vst [vmem:[%s2298_s21 + $0x98] sm:$0xff] %v1571_v11  ;;  %v1575_v59 = vld [vmem:[%s2302_s26 + $0xa8] sm:$0xff]  ;;  %v1577_v24 = vld [vmem:[%s2302_s26 + $0xb0] sm:$0xff]  ;;  %1529 = sbr.rel (!%p1526_p12) target bundleno = 856 (0x358), region = 130 }
 0x363   : >> { %1574 = vst [vmem:[%s2298_s21 + $0xa0] sm:$0xff] %v1573_v15  ;;  %v1579_v44 = vld [vmem:[%s2302_s26 + $0xb8] sm:$0xff]  ;;  %1576 = vst [vmem:[%s2298_s21 + $0xa8] sm:$0xff] %v1575_v59  ;;  %v1581_v58 = vld [vmem:[%s2302_s26 + $0xc0] sm:$0xff] }
 0x364   : >> { %1578 = vst [vmem:[%s2298_s21 + $0xb0] sm:$0xff] %v1577_v24  ;;  %1580 = vst [vmem:[%s2298_s21 + $0xb8] sm:$0xff] %v1579_v44  ;;  %v1583_v47 = vld [vmem:[%s2302_s26 + $0xc8] sm:$0xff]  ;;  %v1585_v18 = vld [vmem:[%s2302_s26 + $0xd0] sm:$0xff] }
 0x365   : >> { %1582 = vst [vmem:[%s2298_s21 + $0xc0] sm:$0xff] %v1581_v58  ;;  %1584 = vst [vmem:[%s2298_s21 + $0xc8] sm:$0xff] %v1583_v47  ;;  %v1587_v19 = vld [vmem:[%s2302_s26 + $0xd8] sm:$0xff]  ;;  %v1589_v17 = vld [vmem:[%s2302_s26 + $0xe0] sm:$0xff] }
 0x366   : >> { %1586 = vst [vmem:[%s2298_s21 + $0xd0] sm:$0xff] %v1585_v18  ;;  %v1591_v1 = vld [vmem:[%s2302_s26 + $0xe8] sm:$0xff]  ;;  %1588 = vst [vmem:[%s2298_s21 + $0xd8] sm:$0xff] %v1587_v19  ;;  %v1593_v25 = vld [vmem:[%s2302_s26 + $0xf0] sm:$0xff] }
 0x367   : >> { %1590 = vst [vmem:[%s2298_s21 + $0xe0] sm:$0xff] %v1589_v17  ;;  %1592 = vst [vmem:[%s2298_s21 + $0xe8] sm:$0xff] %v1591_v1  ;;  %v1595_v22 = vld [vmem:[%s2302_s26 + $0xf8] sm:$0xff]  ;;  %s3127_s26 = smov %s3058_s28 }
 0x368   : >> { %1594 = vst [vmem:[%s2298_s21 + $0xf0] sm:$0xff] %v1593_v25  ;;  %1596 = vst [vmem:[%s2298_s21 + $0xf8] sm:$0xff] %v1595_v22  ;;  %s3126_s21 = smov %s1603_s29 }
 0x369 PF: > { %s3099_s30 = sand.u32 31, %s3133_s18   ;;  %s1822_s6 = sshll.u32 %s2991_s20, 8 }
 0x36a   : > { %s1608_s7 = scalar_lea.vmem %s2881_s12, %s1822_s6 [#allocation2]   ;;  %s1610_s9 = scalar_lea.vmem %s2985_s16, %s1822_s6  }
 0x36b   : > { %p1816_p13 = scmp.le.s32.totalorder %s3099_s30, 0 }
 0x36c   : > { %s2312_s10 = smov (!%p1816_p13), %s1610_s9   ;;  %s2316_s11 = smov (!%p1816_p13), %s1608_s7  }
 0x36d   : > { %1701 = sbr.rel (%p1816_p13) target bundleno = 894 (0x37e), region = 135  ;;  %s2320_s13 = smov (!%p1816_p13), 0  }
 0x36e   : > { %s2324_s14 = smov (!%p1816_p13), 0  }
 0x374 LB: >> { %v1620_v0 = vld [vmem:[%s2318_s11] sm:$0xff]  ;;  %s1622_s18 = sadd.s32 1, %s2322_s13  ;;  %s1614_s14 = sadd.s32 1, %s2326_s14   ;;  %s2326_s14 = sphi %s2324_s14, %s1614_s14   ;;  %s2322_s13 = sphi %s2320_s13, %s2321_s13   ;;  %s2318_s11 = sphi %s2316_s11, %s1627_s11   ;;  %s2314_s10 = sphi %s2312_s10, %s1628_s10  }
 0x375   : >> { %1621 = vst [vmem:[%s2314_s10] sm:$0xff] %v1620_v0  ;;  %p1623_p0 = scmp.ge.s32.totalorder %s1622_s18, %s3099_s30  ;;  %p1613_p1 = scmp.ge.s32.totalorder %s1614_s14, %s3099_s30 }
 0x377   : >> { %s3137_s18 = smov (%p1623_p0, %s1622_s18), 0  ;;  %1616 = sbr.rel (!%p1613_p1) target bundleno = 884 (0x374), region = 141 }
 0x378   : >> { %s1817_s12 = sshll.u32 %s3137_s18, 3  ;;  %s2321_s13 = smov %s3137_s18  }
 0x379   : >> { %s1627_s11 = scalar_lea.vmem %s1608_s7, %s1817_s12 [#allocation2]   ;;  %s1628_s10 = scalar_lea.vmem %s1610_s9, %s1817_s12  }
 0x37e PF: > { %p12_p2 = scmp.ge.s32.totalorder %s2373_s22, 4   ;;  %s3129_s18 = smov %s2290_s19 }
 0x37f   : > { %s3130_s19 = smov %s2381_s25  ;;  %s3131_s20 = smov %s2373_s22 }
 0x380   :  { %14 = sbr.rel (!%p12_p2) target bundleno = 2 (0x2), region = 152 }

</bundles_post_ra>
